<compile_context>
chip_gen: v7x
topology: tpu7x:2x2x1
jax: 0.10.0
libtpu: 0.0.40
codegen_flags: <defaults>
</compile_context>

<pallas_src>
import functools

import numpy as np
import jax
import jax.numpy as jnp
from jax.experimental import pallas as pl
from jax.experimental.pallas import tpu as pltpu


def _l1out_ub_kernel(x_ref, y_ref, w13_ref, b13_ref, w2_ref, b2_ref, w4_ref, b4_ref,
                     out_ref, *, total_b, block_b, steps_per_core, hidden_half,
                     mm_dtype, need_mask, pack_reduce):
    c = pl.program_id(0)          # core (parallel) axis
    i = pl.program_id(1)          # batch-tile (reduction) axis

    @pl.when(i == 0)
    def _init():
        out_ref[...] = jnp.zeros_like(out_ref)

    f32 = jnp.float32
    x = x_ref[...].astype(mm_dtype)          # MXU operand dtype (bf16 by default)
    y = y_ref[...].astype(f32)               # elementwise math stays f32
    bb = y.shape[0]

    # Fused first layer: x @ [w1 | w3] + [b1 | b3], ReLU.
    h = jnp.maximum(
        jnp.dot(x, w13_ref[...], preferred_element_type=f32) + b13_ref[...], 0.0)
    hb = h.astype(mm_dtype)
    # Second layer as two dense dots (no zero-padded block-diagonal matmul).
    mu = jnp.dot(hb[:, :hidden_half], w2_ref[...],
                 preferred_element_type=f32) + b2_ref[...]
    logvar = jnp.tanh(jnp.dot(hb[:, hidden_half:], w4_ref[...],
                              preferred_element_type=f32) + b4_ref[...])
    inv_var = jnp.exp(-logvar)

    miv = mu * inv_var
    d = mu - y
    # Seven per-feature column-sum contributions (constants folded into the epilogue).
    terms = (y * y, y, inv_var, miv, logvar, mu * miv, d * d * inv_var)

    if need_mask:
        rows_left = total_b - (c * steps_per_core + i) * block_b
        row_ok = jax.lax.broadcasted_iota(jnp.int32, (bb, 1), 0) < rows_left

    if pack_reduce:
        # Lane-dense packed reduction: one [bb, 7*y_dim] sum instead of 7 sparse ones.
        contrib = jnp.concatenate(terms, axis=-1)
        if need_mask:
            contrib = jnp.where(row_ok, contrib, 0.0)
        sums = jnp.sum(contrib, axis=0, keepdims=True)          # [1, 7*y_dim]
    else:
        if need_mask:
            terms = tuple(jnp.where(row_ok, t, 0.0) for t in terms)
        sums = jnp.concatenate(
            [jnp.sum(t, axis=0, keepdims=True) for t in terms], axis=-1)

    out_ref[...] += sums.reshape(out_ref.shape)


def l1out_ub_forward(x, y, params, *, max_batch_block=1024, matmul_dtype=jnp.bfloat16):
    batch, x_dim = x.shape
    y_dim = y.shape[1]
    hidden_half = params["w1"].shape[1]
    assert batch >= 2, "L1OutUB needs batch_size >= 2 (log(B - 1))."

    f32 = jnp.float32
    mm = matmul_dtype
    # Weight prep (tiny, done once): fused first layer, split dense second layer.
    w13 = jnp.concatenate([params["w1"], params["w3"]], axis=1).astype(mm)
    b13 = jnp.concatenate([params["b1"], params["b3"]], axis=1).astype(f32)
    w2 = params["w2"].astype(mm)
    b2 = params["b2"].astype(f32)
    w4 = params["w4"].astype(mm)
    b4 = params["b4"].astype(f32)

    # Batch tiling: one full block if it fits, otherwise fixed large tiles + ragged mask.
    bb = batch if batch <= max_batch_block else max_batch_block
    total_blocks = pl.cdiv(batch, bb)
    num_cores = 2 if total_blocks >= 2 else 1          # v7x: split across both TCs
    steps_per_core = pl.cdiv(total_blocks, num_cores)
    clamp_needed = num_cores * steps_per_core > total_blocks
    need_mask = num_cores * steps_per_core * bb != batch
    pack_reduce = y_dim < 128
    w_pack = 7 * y_dim

    def tile_map(c, i):
        blk = c * steps_per_core + i
        if clamp_needed:
            blk = jnp.minimum(blk, total_blocks - 1)    # re-read last block, masked out
        return (blk, 0)

    const_map = lambda c, i: (0, 0)

    # VMEM budget hint: double-buffered streamed tiles + (double-buffered) residents.
    streamed = 2 * bb * (x_dim * x.dtype.itemsize + y_dim * y.dtype.itemsize)
    resident = 2 * sum(int(a.size) * a.dtype.itemsize for a in (w13, b13, w2, b2, w4, b4))
    vmem_limit = int(min(max(2 * (streamed + resident) + (8 << 20), 32 << 20), 64 << 20))

    kernel = functools.partial(
        _l1out_ub_kernel, total_b=batch, block_b=bb, steps_per_core=steps_per_core,
        hidden_half=hidden_half, mm_dtype=mm, need_mask=need_mask,
        pack_reduce=pack_reduce)

    partial_sums = pl.pallas_call(
        kernel,
        out_shape=jax.ShapeDtypeStruct((num_cores, 1, w_pack), jnp.float32),
        grid_spec=pltpu.PrefetchScalarGridSpec(
            num_scalar_prefetch=0,
            grid=(num_cores, steps_per_core),
            in_specs=[
                pl.BlockSpec((bb, x_dim), tile_map),                    # x tile (native dtype)
                pl.BlockSpec((bb, y_dim), tile_map),                    # y tile (native dtype)
                pl.BlockSpec((x_dim, 2 * hidden_half), const_map),      # resident weights
                pl.BlockSpec((1, 2 * hidden_half), const_map),
                pl.BlockSpec((hidden_half, y_dim), const_map),
                pl.BlockSpec((1, y_dim), const_map),
                pl.BlockSpec((hidden_half, y_dim), const_map),
                pl.BlockSpec((1, y_dim), const_map),
            ],
            out_specs=pl.BlockSpec((1, 1, w_pack), lambda c, i: (c, 0, 0)),
        ),
        compiler_params=pltpu.CompilerParams(
            dimension_semantics=("parallel", "arbitrary"),
            vmem_limit_bytes=vmem_limit),
    )(x, y, w13, b13, w2, b2, w4, b4)

    # Tiny f32 JAX epilogue: combine per-core partials, fold into the scalar bound.
    sums = jnp.sum(partial_sums.reshape(num_cores, 7, y_dim), axis=0)
    s_y2, s_y, s_iv, s_miv, s_lv, s_m2iv, s_d2iv = [sums[k] for k in range(7)]
    bf = jnp.float32(batch)
    sum_lv = jnp.sum(s_lv)
    pos_mean = (-0.5 * jnp.sum(s_d2iv) - 0.5 * sum_lv) / bf
    # sum_{i,j} all_probs[i,j] via the expanded squared difference (kept in f32).
    sum_sq = (jnp.sum(s_y2 * s_iv) - 2.0 * jnp.sum(s_y * s_miv) + bf * jnp.sum(s_m2iv))
    sum_all_probs = -0.5 * sum_sq - 0.5 * bf * sum_lv
    # logsumexp_k(all_probs[i,j] + mask) == all_probs[i,j] + log((B-1) + e^-20) for B >= 2.
    lse_const = jnp.log(bf - 1.0 + jnp.exp(jnp.float32(-20.0)))
    neg_mean = sum_all_probs / (bf * bf) + lse_const - jnp.log(bf - 1.0)
    return pos_mean - neg_mean


def reference_forward(x, y, p):
    """Pure-JAX transcription of the PyTorch forward (including its broadcasting)."""
    B = y.shape[0]
    h_mu = jnp.maximum(x @ p["w1"] + p["b1"], 0.0)
    mu = h_mu @ p["w2"] + p["b2"]
    h_lv = jnp.maximum(x @ p["w3"] + p["b3"], 0.0)
    logvar = jnp.tanh(h_lv @ p["w4"] + p["b4"])

    positive = jnp.sum(-(mu - y) ** 2 / 2.0 / jnp.exp(logvar) - logvar / 2.0, axis=-1)
    all_probs = jnp.sum(-(y[None, :, :] - mu[:, None, :]) ** 2 / 2.0
                        / jnp.exp(logvar)[:, None, :]
                        - logvar[:, None, :] / 2.0, axis=-1)           # [B, B]
    diag_mask = jnp.eye(B, dtype=x.dtype)[:, :, None] * -20.0          # [B, B, 1]
    v = all_probs + diag_mask                                          # [B, B, B]
    negative = jax.scipy.special.logsumexp(v, axis=0) - jnp.log(B - 1.0)
    return jnp.mean(positive - negative)


def init_params(key, x_dim, y_dim, hidden_size):
    h = hidden_size // 2
    ks = jax.random.split(key, 8)
    f = jnp.float32
    return {
        "w1": (jax.random.normal(ks[0], (x_dim, h)) * 0.1).astype(f),
        "b1": (jax.random.normal(ks[1], (1, h)) * 0.1).astype(f),
        "w2": (jax.random.normal(ks[2], (h, y_dim)) * 0.1).astype(f),
        "b2": (jax.random.normal(ks[3], (1, y_dim)) * 0.1).astype(f),
        "w3": (jax.random.normal(ks[4], (x_dim, h)) * 0.1).astype(f),
        "b3": (jax.random.normal(ks[5], (1, h)) * 0.1).astype(f),
        "w4": (jax.random.normal(ks[6], (h, y_dim)) * 0.1).astype(f),
        "b4": (jax.random.normal(ks[7], (1, y_dim)) * 0.1).astype(f),
    }


if __name__ == "__main__":
    B, x_dim, y_dim, hidden_size = 8, 32, 16, 32

    key = jax.random.PRNGKey(0)
    k_param, k_x, k_y = jax.random.split(key, 3)
    params = init_params(k_param, x_dim, y_dim, hidden_size)
    x = jax.random.normal(k_x, (B, x_dim), dtype=jnp.float32)
    y = jax.random.normal(k_y, (B, y_dim), dtype=jnp.float32)

    ref = jax.block_until_ready(reference_forward(x, y, params))

    # Exact-path validation (f32 MXU operands): tight tolerance.
    out_f32 = jax.block_until_ready(
        l1out_ub_forward(x, y, params, matmul_dtype=jnp.float32))
    np.testing.assert_allclose(np.asarray(out_f32), np.asarray(ref),
                               rtol=2e-3, atol=1e-3)

    # Production path (bf16 MXU operands, f32 accumulation): bf16-appropriate tolerance.
    out_bf16 = jax.block_until_ready(l1out_ub_forward(x, y, params))
    np.testing.assert_allclose(np.asarray(out_bf16), np.asarray(ref),
                               rtol=2e-2, atol=2e-2)

    print("KERNEL_OK")
</pallas_src>

<mosaic_0001>
module attributes {stable_mosaic.version = 11 : i64} {
  func.func @_l1out_ub_kernel(%arg0: i32, %arg1: i32, %arg2: memref<8x32xf32, #tpu.memory_space<vmem>>, %arg3: memref<8x16xf32, #tpu.memory_space<vmem>>, %arg4: memref<32x32xf32, #tpu.memory_space<vmem>>, %arg5: memref<1x32xf32, #tpu.memory_space<vmem>>, %arg6: memref<16x16xf32, #tpu.memory_space<vmem>>, %arg7: memref<1x16xf32, #tpu.memory_space<vmem>>, %arg8: memref<16x16xf32, #tpu.memory_space<vmem>>, %arg9: memref<1x16xf32, #tpu.memory_space<vmem>>, %arg10: memref<1x1x112xf32, #tpu.memory_space<vmem>>) attributes {dimension_semantics = [#tpu.dimension_semantics<parallel>, #tpu.dimension_semantics<arbitrary>], iteration_bounds = array<i64: 1, 1>, scalar_prefetch = 0 : i64, scratch_operands = 0 : i64, tpu.core_type = #tpu.core_type<tc>, window_params = [{transform_indices = @transform_0, window_bounds = array<i64: 8, 32>}, {transform_indices = @transform_1, window_bounds = array<i64: 8, 16>}, {pipeline_mode = #tpu.pipeline_mode<synchronous>, transform_indices = @transform_2, window_bounds = array<i64: 32, 32>}, {pipeline_mode = #tpu.pipeline_mode<synchronous>, transform_indices = @transform_3, window_bounds = array<i64: 1, 32>}, {pipeline_mode = #tpu.pipeline_mode<synchronous>, transform_indices = @transform_4, window_bounds = array<i64: 16, 16>}, {pipeline_mode = #tpu.pipeline_mode<synchronous>, transform_indices = @transform_5, window_bounds = array<i64: 1, 16>}, {pipeline_mode = #tpu.pipeline_mode<synchronous>, transform_indices = @transform_6, window_bounds = array<i64: 16, 16>}, {pipeline_mode = #tpu.pipeline_mode<synchronous>, transform_indices = @transform_7, window_bounds = array<i64: 1, 16>}, {transform_indices = @transform_8, window_bounds = array<i64: 1, 1, 112>}]} {
    %c0_i32 = arith.constant 0 : i32
    %0 = arith.cmpi eq, %arg1, %c0_i32 : i32
    %1 = arith.extui %0 : i1 to i32
    %c0_i32_0 = arith.constant 0 : i32
    %2 = arith.cmpi ne, %1, %c0_i32_0 : i32
    scf.if %2 {
      %cst_27 = arith.constant 0.000000e+00 : f32
      %41 = vector.broadcast %cst_27 : f32 to vector<1x1x112xf32>
      %c0_28 = arith.constant 0 : index
      %c0_29 = arith.constant 0 : index
      %c0_30 = arith.constant 0 : index
      %42 = vector.load %arg10[%c0_28, %c0_29, %c0_30] : memref<1x1x112xf32, #tpu.memory_space<vmem>>, vector<1x1x112xf32>
      tpu.vector_store %arg10[%c0_28, %c0_29, %c0_30], %41 {strides = array<i32>} : memref<1x1x112xf32, #tpu.memory_space<vmem>>, vector<1x1x112xf32>,
    } else {
    }
    %c0 = arith.constant 0 : index
    %c0_1 = arith.constant 0 : index
    %3 = vector.load %arg2[%c0, %c0_1] : memref<8x32xf32, #tpu.memory_space<vmem>>, vector<8x32xf32>
    %c0_2 = arith.constant 0 : index
    %c0_3 = arith.constant 0 : index
    %4 = vector.load %arg3[%c0_2, %c0_3] : memref<8x16xf32, #tpu.memory_space<vmem>>, vector<8x16xf32>
    %c0_4 = arith.constant 0 : index
    %c0_5 = arith.constant 0 : index
    %5 = vector.load %arg4[%c0_4, %c0_5] : memref<32x32xf32, #tpu.memory_space<vmem>>, vector<32x32xf32>
    %cst = arith.constant dense<0.000000e+00> : vector<8x32xf32>
    %6 = tpu.matmul %3, %5, %cst {dimension_numbers = #tpu.dot_dimension_numbers<[1], [0], [0], [1], [0, 0, 1, 1], [], []>} : vector<8x32xf32>, vector<32x32xf32>, vector<8x32xf32> -> vector<8x32xf32>
    %c0_6 = arith.constant 0 : index
    %c0_7 = arith.constant 0 : index
    %7 = vector.load %arg5[%c0_6, %c0_7] : memref<1x32xf32, #tpu.memory_space<vmem>>, vector<1x32xf32>
    %8 = vector.broadcast %7 : vector<1x32xf32> to vector<8x32xf32>
    %9 = arith.addf %6, %8 : vector<8x32xf32>
    %cst_8 = arith.constant 0.000000e+00 : f32
    %10 = vector.broadcast %cst_8 : f32 to vector<8x32xf32>
    %11 = arith.maximumf %9, %10 : vector<8x32xf32>
    %12 = vector.extract_strided_slice %11 {offsets = [0, 0], sizes = [8, 16], strides = [1, 1]} : vector<8x32xf32> to vector<8x16xf32>
    %c0_9 = arith.constant 0 : index
    %c0_10 = arith.constant 0 : index
    %13 = vector.load %arg6[%c0_9, %c0_10] : memref<16x16xf32, #tpu.memory_space<vmem>>, vector<16x16xf32>
    %cst_11 = arith.constant dense<0.000000e+00> : vector<8x16xf32>
    %14 = tpu.matmul %12, %13, %cst_11 {dimension_numbers = #tpu.dot_dimension_numbers<[1], [0], [0], [1], [0, 0, 1, 1], [], []>} : vector<8x16xf32>, vector<16x16xf32>, vector<8x16xf32> -> vector<8x16xf32>
    %c0_12 = arith.constant 0 : index
    %c0_13 = arith.constant 0 : index
    %15 = vector.load %arg7[%c0_12, %c0_13] : memref<1x16xf32, #tpu.memory_space<vmem>>, vector<1x16xf32>
    %16 = vector.broadcast %15 : vector<1x16xf32> to vector<8x16xf32>
    %17 = arith.addf %14, %16 : vector<8x16xf32>
    %18 = vector.extract_strided_slice %11 {offsets = [0, 16], sizes = [8, 16], strides = [1, 1]} : vector<8x32xf32> to vector<8x16xf32>
    %c0_14 = arith.constant 0 : index
    %c0_15 = arith.constant 0 : index
    %19 = vector.load %arg8[%c0_14, %c0_15] : memref<16x16xf32, #tpu.memory_space<vmem>>, vector<16x16xf32>
    %cst_16 = arith.constant dense<0.000000e+00> : vector<8x16xf32>
    %20 = tpu.matmul %18, %19, %cst_16 {dimension_numbers = #tpu.dot_dimension_numbers<[1], [0], [0], [1], [0, 0, 1, 1], [], []>} : vector<8x16xf32>, vector<16x16xf32>, vector<8x16xf32> -> vector<8x16xf32>
    %c0_17 = arith.constant 0 : index
    %c0_18 = arith.constant 0 : index
    %21 = vector.load %arg9[%c0_17, %c0_18] : memref<1x16xf32, #tpu.memory_space<vmem>>, vector<1x16xf32>
    %22 = vector.broadcast %21 : vector<1x16xf32> to vector<8x16xf32>
    %23 = arith.addf %20, %22 : vector<8x16xf32>
    %24 = math.tanh %23 : vector<8x16xf32>
    %cst_19 = arith.constant 0.000000e+00 : f32
    %25 = vector.broadcast %cst_19 : f32 to vector<8x16xf32>
    %26 = arith.subf %25, %24 : vector<8x16xf32>
    %27 = math.exp %26 : vector<8x16xf32>
    %28 = arith.mulf %17, %27 : vector<8x16xf32>
    %29 = arith.subf %17, %4 : vector<8x16xf32>
    %30 = arith.mulf %4, %4 : vector<8x16xf32>
    %31 = arith.mulf %17, %28 : vector<8x16xf32>
    %32 = arith.mulf %29, %29 : vector<8x16xf32>
    %33 = arith.mulf %32, %27 : vector<8x16xf32>
    %34 = tpu.concatenate %30, %4, %27, %28, %24, %31, %33 in 1 : vector<8x16xf32>, vector<8x16xf32>, vector<8x16xf32>, vector<8x16xf32>, vector<8x16xf32>, vector<8x16xf32>, vector<8x16xf32> -> vector<8x112xf32>
    %cst_20 = arith.constant dense<0.000000e+00> : vector<112xf32>
    %35 = vector.multi_reduction <add>, %34, %cst_20 [0] : vector<8x112xf32> to vector<112xf32>
    %36 = vector.shape_cast %35 : vector<112xf32> to vector<1x112xf32>
    %c0_21 = arith.constant 0 : index
    %c0_22 = arith.constant 0 : index
    %c0_23 = arith.constant 0 : index
    %37 = vector.load %arg10[%c0_21, %c0_22, %c0_23] : memref<1x1x112xf32, #tpu.memory_space<vmem>>, vector<1x1x112xf32>
    %38 = vector.shape_cast %36 : vector<1x112xf32> to vector<1x1x112xf32>
    %39 = arith.addf %37, %38 : vector<1x1x112xf32>
    %c0_24 = arith.constant 0 : index
    %c0_25 = arith.constant 0 : index
    %c0_26 = arith.constant 0 : index
    %40 = vector.load %arg10[%c0_24, %c0_25, %c0_26] : memref<1x1x112xf32, #tpu.memory_space<vmem>>, vector<1x1x112xf32>
    tpu.vector_store %arg10[%c0_24, %c0_25, %c0_26], %39 {strides = array<i32>} : memref<1x1x112xf32, #tpu.memory_space<vmem>>, vector<1x1x112xf32>,
    return
  }
  func.func @transform_0(%arg0: i32, %arg1: i32) -> (i32, i32) {
    %c1_i32 = arith.constant 1 : i32
    %0 = arith.muli %arg0, %c1_i32 : i32
    %1 = arith.addi %0, %arg1 : i32
    %c0_i32 = arith.constant 0 : i32
    %c0_i32_0 = arith.constant 0 : i32
    return %1, %c0_i32 : i32, i32
  }
  func.func @transform_1(%arg0: i32, %arg1: i32) -> (i32, i32) {
    %c1_i32 = arith.constant 1 : i32
    %0 = arith.muli %arg0, %c1_i32 : i32
    %1 = arith.addi %0, %arg1 : i32
    %c0_i32 = arith.constant 0 : i32
    %c0_i32_0 = arith.constant 0 : i32
    return %1, %c0_i32 : i32, i32
  }
  func.func @transform_2(%arg0: i32, %arg1: i32) -> (i32, i32) {
    %c0_i32 = arith.constant 0 : i32
    %c0_i32_0 = arith.constant 0 : i32
    %c0_i32_1 = arith.constant 0 : i32
    return %c0_i32, %c0_i32_0 : i32, i32
  }
  func.func @transform_3(%arg0: i32, %arg1: i32) -> (i32, i32) {
    %c0_i32 = arith.constant 0 : i32
    %c0_i32_0 = arith.constant 0 : i32
    %c0_i32_1 = arith.constant 0 : i32
    return %c0_i32, %c0_i32_0 : i32, i32
  }
  func.func @transform_4(%arg0: i32, %arg1: i32) -> (i32, i32) {
    %c0_i32 = arith.constant 0 : i32
    %c0_i32_0 = arith.constant 0 : i32
    %c0_i32_1 = arith.constant 0 : i32
    return %c0_i32, %c0_i32_0 : i32, i32
  }
  func.func @transform_5(%arg0: i32, %arg1: i32) -> (i32, i32) {
    %c0_i32 = arith.constant 0 : i32
    %c0_i32_0 = arith.constant 0 : i32
    %c0_i32_1 = arith.constant 0 : i32
    return %c0_i32, %c0_i32_0 : i32, i32
  }
  func.func @transform_6(%arg0: i32, %arg1: i32) -> (i32, i32) {
    %c0_i32 = arith.constant 0 : i32
    %c0_i32_0 = arith.constant 0 : i32
    %c0_i32_1 = arith.constant 0 : i32
    return %c0_i32, %c0_i32_0 : i32, i32
  }
  func.func @transform_7(%arg0: i32, %arg1: i32) -> (i32, i32) {
    %c0_i32 = arith.constant 0 : i32
    %c0_i32_0 = arith.constant 0 : i32
    %c0_i32_1 = arith.constant 0 : i32
    return %c0_i32, %c0_i32_0 : i32, i32
  }
  func.func @transform_8(%arg0: i32, %arg1: i32) -> (i32, i32, i32) {
    %c0_i32 = arith.constant 0 : i32
    %c0_i32_0 = arith.constant 0 : i32
    %c0_i32_1 = arith.constant 0 : i32
    return %arg0, %c0_i32, %c0_i32_0 : i32, i32, i32
  }
}

</mosaic_0001>

<bundles_post_ra>
// kernel: tpu_custom_call.1
= control target key start
LH: loop header
LB: loop body
LE: loop exit
PB: predicated region body
PF: predicated region fallthrough
CT: control target
= control target key end

     0   :  { %13 = vsyncpa [#allocation3], 0  ;;  %s762_s0 = inlined_call_operand.hbm [shape: f32[8,32], index: 0, kind: input, shape index: {}]   ;;  %s763_s1 = inlined_call_operand.hbm [shape: f32[8,16], index: 1, kind: input, shape index: {}]   ;;  %s764_s2 = inlined_call_operand.hbm [shape: f32[32,32], index: 2, kind: input, shape index: {}]   ;;  %s765_s3 = inlined_call_operand.vmem [shape: f32[1,32], index: 3, kind: input, shape index: {}]   ;;  %s766_s4 = inlined_call_operand.hbm [shape: f32[16,16], index: 4, kind: input, shape index: {}]   ;;  %s767_s5 = inlined_call_operand.vmem [shape: f32[1,16], index: 5, kind: input, shape index: {}]   ;;  %s768_s6 = inlined_call_operand.vmem [shape: f32[16,16], index: 6, kind: input, shape index: {}]   ;;  %s769_s7 = inlined_call_operand.vmem [shape: f32[1,16], index: 7, kind: input, shape index: {}]   ;;  %s770_s8 = inlined_call_operand.hbm [shape: f32[1,1,112], index: 8, kind: output, shape index: {}]  }
   0x1   :  { %14 = vsyncpa [#allocation6], 0 }
   0x2   :  { %15 = vsyncpa [#allocation9], 0 }
   0x3   :  { %16 = vsyncpa [#allocation4], 0  ;;  %s615_s27 = smov [#allocation5]   ;;  %s616_s29 = smov [#allocation2]  }
   0x4   :  { %s39_s28 = sshll.u32 %s615_s27, 4  ;;  %s26_s30 = sshll.u32 %s616_s29, 4  ;;  %s40_s28 = int_to_ptr.vmem [resolvable:$true] %s39_s28  ;;  %s27_s30 = int_to_ptr.vmem [resolvable:$true] %s26_s30 }
   0x5   :  { %s497_s11 = scalar_lea.hbm %s763_s1, 128 }
   0x6   :  { %p498_p0 = scmp.ne.s32.totalorder %s763_s1, %s497_s11  ;;  %p501_p1 = scmp.lt.u32.totalorder %s497_s11, %s763_s1 }
   0x8   :  { %p503_p2 = pnand %p501_p1, %p498_p0 }
   0xa   :  { %506 = shalt.err (!%p503_p2)
}
   0xb   :  { %s507_s16 = scalar_lea.vmem %s40_s28, 128  ;;  %p512_p4 = scmp.lt.s32.totalorder %s40_s28, %s40_s28 }
   0xc   :  { %p508_p3 = scmp.ne.s32.totalorder %s40_s28, %s507_s16  ;;  %p513_p5 = scmp.lt.s32.totalorder %s507_s16, %s507_s16 }
   0xe   :  { %p514_p6 = por %p513_p5, %p512_p4 }
  0x10   :  { %p515_p7 = pnand %p514_p6, %p508_p3 }
  0x12   :  { %518 = shalt.err (!%p515_p7)
}
  0x13   :  { %42 = dma.hbm_to_vmem [thread:$0]  %s763_s1, 128, %s40_s28, [#allocation6]  }
  0x14   :  { %s519_s21 = scalar_lea.hbm %s762_s0, 128 }
  0x15   :  { %p520_p8 = scmp.ne.s32.totalorder %s762_s0, %s519_s21  ;;  %p523_p9 = scmp.lt.u32.totalorder %s519_s21, %s762_s0 }
  0x17   :  { %p525_p10 = pnand %p523_p9, %p520_p8 }
  0x19   :  { %528 = shalt.err (!%p525_p10)
}
  0x1a   :  { %s529_s26 = scalar_lea.vmem %s27_s30, 128  ;;  %p534_p12 = scmp.lt.s32.totalorder %s27_s30, %s27_s30 }
  0x1b   :  { %p530_p11 = scmp.ne.s32.totalorder %s27_s30, %s529_s26  ;;  %p535_p13 = scmp.lt.s32.totalorder %s529_s26, %s529_s26 }
  0x1d   :  { %p536_p0 = por %p535_p13, %p534_p12 }
  0x1f   :  { %p537_p1 = pnand %p536_p0, %p530_p11 }
  0x21   :  { %540 = shalt.err (!%p537_p1)
}
  0x22   :  { %29 = dma.hbm_to_vmem [thread:$0]  %s762_s0, 128, %s27_s30, [#allocation3]  }
  0x23   :  { %s617_s28 = smov [#allocation7]   ;;  %s541_s11 = scalar_lea.hbm %s764_s2, 512 }
  0x24   :  { %s48_s29 = sshll.u32 %s617_s28, 4  ;;  %p542_p2 = scmp.ne.s32.totalorder %s764_s2, %s541_s11  ;;  %s49_s29 = int_to_ptr.vmem [resolvable:$true] %s48_s29 }
  0x25   :  { %p545_p3 = scmp.lt.u32.totalorder %s541_s11, %s764_s2 }
  0x27   :  { %p547_p4 = pnand %p545_p3, %p542_p2 }
  0x29   :  { %550 = shalt.err (!%p547_p4)
}
  0x2a   :  { %s551_s16 = scalar_lea.vmem %s49_s29, 512  ;;  %p556_p6 = scmp.lt.s32.totalorder %s49_s29, %s49_s29 }
  0x2b   :  { %p552_p5 = scmp.ne.s32.totalorder %s49_s29, %s551_s16  ;;  %p557_p7 = scmp.lt.s32.totalorder %s551_s16, %s551_s16 }
  0x2d   :  { %p558_p8 = por %p557_p7, %p556_p6 }
  0x2f   :  { %p559_p9 = pnand %p558_p8, %p552_p5 }
  0x31   :  { %562 = shalt.err (!%p559_p9)
}
  0x32   :  { %s618_s0 = smov 128   ;;  %s619_s30 = smov 8  }
  0x33   :  { %54 = dma.hbm_to_vmem [thread:$0]  %s764_s2, 512, %s49_s29, [#allocation6], %s618_s0, %s618_s0, %s619_s30  }
  0x34   :  { %s620_s19 = smov [#allocation8]   ;;  %s563_s23 = scalar_lea.hbm %s766_s4, 256 }
  0x35   :  { %s62_s20 = sshll.u32 %s620_s19, 4  ;;  %p564_p10 = scmp.ne.s32.totalorder %s766_s4, %s563_s23  ;;  %s63_s20 = int_to_ptr.vmem [resolvable:$true] %s62_s20 }
  0x36   :  { %p567_p11 = scmp.lt.u32.totalorder %s563_s23, %s766_s4 }
  0x38   :  { %p569_p12 = pnand %p567_p11, %p564_p10 }
  0x3a   :  { %572 = shalt.err (!%p569_p12)
}
  0x3b   :  { %s573_s27 = scalar_lea.vmem %s63_s20, 256  ;;  %p578_p0 = scmp.lt.s32.totalorder %s63_s20, %s63_s20 }
  0x3c   :  { %p574_p13 = scmp.ne.s32.totalorder %s63_s20, %s573_s27  ;;  %p579_p1 = scmp.lt.s32.totalorder %s573_s27, %s573_s27 }
  0x3e   :  { %p580_p2 = por %p579_p1, %p578_p0 }
  0x40   :  { %p581_p3 = pnand %p580_p2, %p574_p13 }
  0x42   :  { %584 = shalt.err (!%p581_p3)
}
  0x43   :  { %68 = dma.hbm_to_vmem [thread:$0]  %s766_s4, 256, %s63_s20, [#allocation9], %s618_s0, %s618_s0, %s619_s30  }
  0x44   :  { %607 = dma.done.wait [#allocation3], 128  }
  0x45   :  { %608 = vsyncadd [#allocation3], 4294967168 }
  0x46   :  { %609 = dma.done.wait [#allocation6], 640  }
  0x47   :  { %610 = vsyncadd [#allocation6], 4294966656 }
  0x48   :  { %611 = dma.done.wait [#allocation9], 256  }
  0x49   :  { %612 = vsyncadd [#allocation9], 4294967040  ;;  %vm93_vm0 = vcmask 909312   ;;  %v621_v0 = vmov 0.0|0.0   ;;  %v622_v1 = vmov 0.0   ;;  %vm623_vm1 = vmmov 0  }
  0x4a   :  { %464 = vmatprep.subr.bf16.mxu0 %v621_v0  ;;  %94 = vst.msk [vmem:[#allocation10] sm:$0x1] %vm93_vm0, %v622_v1  ;;  %447 = vmatprep.mubr.msk.f32.mxu0 %vm623_vm1, %v622_v1  ;;  %v97_v2 = vld [vmem:[#allocation7] sm:$0xff]  ;;  %v98_v3 = vld [vmem:[#allocation7 + $0x8] sm:$0xff]  ;;  %v99_v4 = vld [vmem:[#allocation7 + $0x10] sm:$0xff]  ;;  %vm108_vm2 = vcmask 261120  }
  0x4b   :  { %470 = vmatprep.subr.bf16.mxu1 %v621_v0  ;;  %454 = vmatprep.mubr.msk.f32.mxu1 %vm623_vm1, %v622_v1  ;;  %v465_v5 = vpack.c.bf16 %v98_v3, %v97_v2  ;;  %v100_v6 = vld [vmem:[#allocation7 + $0x18] sm:$0xff]  ;;  %v95_v8 = vld [vmem:[#allocation2] sm:$0xff]  ;;  %v183_v9 = vld [vmem:[#allocation8] sm:$0xff]  ;;  %vm192_vm3 = vcmask 130048   ;;  %s624_s13 = smov 112   ;;  %s626_s0 = smov 64  }
  0x4c   :  { %v468_v7 = vpack.c.bf16 %v100_v6, %v99_v4  ;;  %v184_v10 = vld [vmem:[#allocation8 + $0x8] sm:$0xff]  ;;  %v422_v12 = vld [vmem:[%s765_s3] ss:$0 sm:$0xff]  ;;  %v96_v21 = vld [vmem:[#allocation5] sm:$0xff]  ;;  %s625_s3 = smov 16   ;;  %s628_s30 = smov 96  }
  0x4d   :  { %466 = vmatpush3.bf16.msra.mxu0 %v465_v5  ;;  %v471_v11 = vpack.c.bf16 %v184_v10, %v183_v9  ;;  %v266_v13 = vld [vmem:[%s768_s6] sm:$0xff]  ;;  %v267_v14 = vld [vmem:[%s768_s6 + $0x8] sm:$0xff]  ;;  %s630_s17 = smov 80   ;;  %v355_v39 = vmul.f32 %v96_v21, %v96_v21  ;;  %vm385_vm4 = vcmask 392192   ;;  %vm387_vm5 = vcmask 523264   ;;  %s631_s18 = smov [#allocation10]  }
  0x4e   :  { %467 = vmatprep.subr.bf16.mxu0 %v621_v0  ;;  %v474_v18 = vpack.c.bf16 %v267_v14, %v266_v13  ;;  %v424_v22 = vld [vmem:[%s767_s5] ss:$0 sm:$0xff]  ;;  %s627_s5 = smov 32   ;;  %vm389_vm6 = vcmask 654336   ;;  %vm391_vm7 = vcmask 785408   ;;  %vm393_vm8 = vcmask 916480  }
  0x4f   :  { %472 = vmatpush3.bf16.msra.mxu1 %v471_v11  ;;  %v426_v27 = vld [vmem:[%s769_s7] ss:$0 sm:$0xff]  ;;  %s629_s7 = smov 48   ;;  %s411_s19 = sshll.u32 %s631_s18, 4  ;;  %s412_s19 = int_to_ptr.vmem [resolvable:$true] %s411_s19 }
  0x50   :  { %473 = vmatprep.subr.bf16.mxu1 %v621_v0  ;;  %s585_s20 = scalar_lea.vmem %s412_s19, 16  ;;  %s589_s21 = scalar_lea.vmem %s412_s19, 32 }
  0x51   :  { %469 = vmatpush3.bf16.msra.mxu0 %v468_v7  ;;  %v401_v58 = vld [vmem:[#allocation10] sm:$0x1]  ;;  %p586_p4 = scmp.ne.s32.totalorder %s412_s19, %s585_s20  ;;  %p590_p5 = scmp.lt.s32.totalorder %s412_s19, %s412_s19 }
  0x52   :  { %p591_p6 = scmp.lt.s32.totalorder %s589_s21, %s585_s20 }
  0x54   :  { %448 = vmatmul.mubr.msk.f32.vlgmr.msra.gmra.mrb[0].mxu0 %vm108_vm2, %v95_v8  ;;  %p592_p7 = por %p591_p6, %p590_p5 }
  0x56   :  { %p593_p8 = pnand %p592_p7, %p586_p4 }
 0x127   :  { %v178_v15 = vpop.f32.mrb[0].mxu0 }
 0x128   :  { %v179_v16 = vadd.f32 %v422_v12, %v178_v15  ;;  %v449_v17 = vpop.f32.mrb[1].mxu0 }
 0x12a   :  { %v182_v19 = vmax.f32 %v179_v16, 0.0 }
 0x12c   :  { %275 = vrot.lane.b32.xlu0 %v182_v19, %s624_s13  ;;  %455 = vmatmul.mubr.msk.f32.vlgmr.msra.gmra.mrb[0].mxu1 %vm192_vm3, %v182_v19 }
 0x12d   :  { %475 = vmatpush3.bf16.msra.mxu1 %v474_v18  ;;  %461 = vmatprep.mubr.msk.f32.mxu1 %vm623_vm1, %v622_v1 }
 0x130   :  { %360 = vrot.lane.b32.xlu0 %v96_v21, %s625_s3 }
 0x19e   :  { %v276_v20 = vpop.permute.xlu0 %275 }
 0x19f   :  { %462 = vmatmul.mubr.msk.f32.vlgmr.msra.gmra.mrb[2].mxu1 %vm192_vm3, %v276_v20 }
 0x1a2   :  { %v361_v40 = vpop.permute.xlu0 %360 }
 0x1a3   :  { %v383_v42 = vsel %vm192_vm3, %v355_v39, %v361_v40 }
 0x1ff   :  { %v262_v23 = vpop.f32.mrb[0].mxu1 }
 0x200   :  { %v263_v24 = vadd.f32 %v424_v22, %v262_v23  ;;  %v456_v25 = vpop.f32.mrb[1].mxu1 }
 0x202   :  { %v354_v26 = vsub.f32 %v263_v24, %v96_v21 }
 0x204   :  { %v357_v34 = vmul.f32 %v354_v26, %v354_v26 }
 0x272   :  { %v345_v28 = vpop.f32.mrb[2].mxu1 }
 0x273   :  { %v346_v29 = vadd.f32 %v426_v27, %v345_v28  ;;  %v463_v30 = vpop.f32.mrb[3].mxu1 }
 0x275   :  { %493 = vtanh.f32 %v346_v29 }
 0x27f   :  { %v494_v31 = vpop.eup %493 }
 0x280   :  { %v350_v32 = vsub.f32 0.0, %v494_v31  ;;  %372 = vrot.lane.b32.xlu0 %v494_v31, %s626_s0 }
 0x282   :  { %v351_v33 = vmul.f32 1.442695, %v350_v32 }
 0x284   :  { %495 = vpow2.f32 %v351_v33 }
 0x28e   :  { %v496_v35 = vpop.eup %495 }
 0x28f   :  { %364 = vrot.lane.b32.xlu1 %v496_v35, %s627_s5  ;;  %v358_v36 = vmul.f32 %v496_v35, %v357_v34  ;;  %v353_v37 = vmul.f32 %v496_v35, %v263_v24 }
 0x291   :  { %380 = vrot.lane.b32.xlu0 %v358_v36, %s628_s30  ;;  %v356_v38 = vmul.f32 %v353_v37, %v263_v24 }
 0x293   :  { %368 = vrot.lane.b32.xlu1 %v353_v37, %s629_s7 }
 0x297   :  { %376 = vrot.lane.b32.xlu1 %v356_v38, %s630_s17 }
 0x2f2   :  { %v373_v45 = vpop.permute.xlu0 %372 }
 0x301   :  { %v365_v41 = vpop.permute.xlu1 %364 }
 0x302   :  { %v384_v43 = vsel %vm108_vm2, %v383_v42, %v365_v41 }
 0x303   :  { %v381_v49 = vpop.permute.xlu0 %380 }
 0x305   :  { %v369_v44 = vpop.permute.xlu1 %368 }
 0x306   :  { %v386_v46 = vsel %vm385_vm4, %v384_v43, %v369_v44 }
 0x307   :  { %v388_v47 = vsel %vm387_vm5, %v386_v46, %v373_v45 }
 0x309   :  { %v377_v48 = vpop.permute.xlu1 %376 }
 0x30a   :  { %v390_v50 = vsel %vm389_vm6, %v388_v47, %v377_v48 }
 0x30b   :  { %v392_v51 = vsel %vm391_vm7, %v390_v50, %v381_v49 }
 0x30c   :  { %v394_v52 = vsel %vm393_vm8, %v392_v51, 0.0 }
 0x30d   :  { %v395_v53 = vrot.slane %v394_v52, 4 }
 0x30f   :  { %v396_v54 = vadd.f32 %v395_v53, %v394_v52 }
 0x311   :  { %v397_v55 = vrot.slane %v396_v54, 2 }
 0x313   :  { %v398_v56 = vadd.f32 %v397_v55, %v396_v54 }
 0x315   :  { %v399_v57 = vrot.slane %v398_v56, 1 }
 0x317   :  { %v400_v59 = vadd.f32 %v399_v57, %v398_v56 }
 0x319   :  { %v402_v60 = vadd.f32 %v401_v58, %v400_v59 }
 0x31b   :  { %404 = vst.msk [vmem:[#allocation10] sm:$0x1] %vm93_vm0, %v402_v60 }
 0x31c   :  { %596 = shalt.err (!%p593_p8)
}
 0x31d   :  { %s597_s24 = scalar_lea.hbm %s770_s8, 16 }
 0x31e   :  { %p598_p9 = scmp.ne.s32.totalorder %s770_s8, %s597_s24  ;;  %p601_p10 = scmp.lt.u32.totalorder %s597_s24, %s770_s8 }
 0x320   :  { %p603_p11 = pnand %p601_p10, %p598_p9 }
 0x322   :  { %606 = shalt.err (!%p603_p11)
}
 0x323   :  { %414 = dma.vmem_to_hbm [thread:$0]  %s412_s19, 16, %s770_s8, [#allocation4]  }
 0x324   :  { %613 = dma.done.wait [#allocation4], 16  }
 0x325   :  { %614 = vsyncadd [#allocation4], 4294967280 }
 0x326   :  { %418 = vsyncpa [#allocation3], 1 }
 0x327   :  { %419 = vsyncpa [#allocation6], 1 }
 0x328   :  { %420 = vsyncpa [#allocation9], 1 }
 0x329   :  { %421 = vsyncpa [#allocation4], 1 }

</bundles_post_ra>
